<compile_context>
chip_gen: v7x
topology: tpu7x:2x2x1
jax: 0.10.0
libtpu: 0.0.40
codegen_flags: <defaults>
</compile_context>

<pallas_src>
import functools

import jax
import jax.numpy as jnp
from jax.experimental import pallas as pl
from jax.experimental.pallas import tpu as pltpu

BIAS_VALUE = 0.0        # see TODO above
BIAS_STRENGTH = 1.0

LANE_TILE_DEFAULT = 32768   # 8*32768 = 256K samples / grid step (~3 MiB f32 input block)
MIN_STEPS_DEFAULT = 2       # lets the "parallel" axis shard across v7x's 2 TensorCores

_STATIC_ARGS = ("lane_tile", "min_steps", "ship_dtype", "compute_dtype",
                "input_buffers")


def _round_up(a, m):
    return ((a + m - 1) // m) * m


def _cdiv(a, b):
    return -(-a // b)


def _ae_kernel(w_ref, x_ref, out_ref, *, compute_dtype):
    """Encoder chain + bias penalty; batch on (sublane, lane), weights in SMEM.

    w_ref:   f32[29] in SMEM  (W1 | b1 | W2 | b2 | W3 | b3, row-major)
    x_ref:   ship_dtype[3, 8, L] in VMEM  (feature, sublane, lane)
    out_ref: f32[8, L] in VMEM
    """
    cdt = jnp.dtype(compute_dtype)
    f32 = jnp.dtype(jnp.float32)

    def w(i):                       # scalar weight, cast to the compute dtype
        v = w_ref[i]
        return v if cdt == f32 else v.astype(cdt)

    def xin(f):                     # feature plane, cast to the compute dtype
        v = x_ref[f]
        return v if v.dtype == cdt else v.astype(cdt)

    x0, x1, x2 = xin(0), xin(1), xin(2)

    # enc1: 3 -> 4   (W1 at [0..12), b1 at [12..16))
    h1 = []
    for j in range(4):
        a = (w(j * 3 + 0) * x0
             + w(j * 3 + 1) * x1
             + w(j * 3 + 2) * x2
             + w(12 + j))
        h1.append(jnp.maximum(a, 0.0))

    # enc2: 4 -> 2   (W2 at [16..24), b2 at [24..26))
    h2 = []
    for k in range(2):
        a = (w(16 + k * 4 + 0) * h1[0]
             + w(16 + k * 4 + 1) * h1[1]
             + w(16 + k * 4 + 2) * h1[2]
             + w(16 + k * 4 + 3) * h1[3]
             + w(24 + k))
        h2.append(jnp.maximum(a, 0.0))

    # enc3: 2 -> 1   (W3 at [26..28), b3 at 28)
    c = jnp.maximum(w(26) * h2[0] + w(27) * h2[1] + w(28), 0.0)

    # Penalty epilogue in f32; identity parts constant-folded at trace time.
    c = c if c.dtype == f32 else c.astype(jnp.float32)
    d = c - BIAS_VALUE if BIAS_VALUE != 0.0 else c
    sq = d * d
    out_ref[...] = sq * BIAS_STRENGTH if BIAS_STRENGTH != 1.0 else sq


def pack_params(params):
    """Pack the 29 real encoder weights/biases into one flat f32[29] (call once)."""
    return jnp.concatenate([
        jnp.asarray(params["w1"], jnp.float32).reshape(-1),   # [4,3] -> 12
        jnp.asarray(params["b1"], jnp.float32).reshape(-1),   # 4
        jnp.asarray(params["w2"], jnp.float32).reshape(-1),   # [2,4] -> 8
        jnp.asarray(params["b2"], jnp.float32).reshape(-1),   # 2
        jnp.asarray(params["w3"], jnp.float32).reshape(-1),   # [1,2] -> 2
        jnp.asarray(params["b3"], jnp.float32).reshape(-1),   # 1
    ])                                                        # total: 29


def _plan_lanes(n, lane_tile, min_steps):
    """Balanced lane tiling: every tile is the same (128-aligned) size."""
    lanes_needed = _round_up(_cdiv(n, 8), 128)
    num_tiles = max(_cdiv(lanes_needed, lane_tile), min_steps)
    lt = _round_up(_cdiv(lanes_needed, num_tiles), 128)
    num_tiles = _cdiv(lanes_needed, lt)            # lt rounding may drop a tile
    return lt, lt * num_tiles, num_tiles


@functools.partial(jax.jit, static_argnames=_STATIC_ARGS)
def ae_forward_planar(xt, w_packed, *, lane_tile=LANE_TILE_DEFAULT,
                      min_steps=MIN_STEPS_DEFAULT, ship_dtype=jnp.float32,
                      compute_dtype=jnp.float32, input_buffers=2):
    """Feature-major entry point (preferred: no transpose glue).

    xt: [3, N] feature-major input, w_packed: f32[29] from pack_params().
    Returns [N, 1] float32.
    """
    f, n = xt.shape
    assert f == 3, xt.shape
    ship_dtype = jnp.dtype(ship_dtype)

    lt, n_lanes, num_tiles = _plan_lanes(n, lane_tile, min_steps)
    n_pad = 8 * n_lanes

    xt = xt.astype(ship_dtype)
    if n_pad != n:                                   # lane-align the batch
        xt = jnp.pad(xt, ((0, 0), (0, n_pad - n)))
    # Free row-major reshape: sample s -> (sublane s // n_lanes, lane s % n_lanes).
    xt = xt.reshape(3, 8, n_lanes)

    x_spec_kwargs = {}
    if input_buffers > 2:                            # optional deeper pipeline (v5e)
        x_spec_kwargs["pipeline_mode"] = pl.Buffered(input_buffers)

    cp_kwargs = {"dimension_semantics": ("parallel",)}
    est_vmem = (input_buffers * 3 * 8 * lt * ship_dtype.itemsize
                + 2 * 8 * lt * 4 + (2 << 20))
    if est_vmem > (16 << 20):                        # above v5e's default scoped VMEM
        cp_kwargs["vmem_limit_bytes"] = min(est_vmem, 64 << 20)

    out = pl.pallas_call(
        functools.partial(_ae_kernel, compute_dtype=compute_dtype),
        out_shape=jax.ShapeDtypeStruct((8, n_lanes), jnp.float32),
        grid=(num_tiles,),
        in_specs=[
            pl.BlockSpec(memory_space=pltpu.MemorySpace.SMEM),           # 29 scalars
            pl.BlockSpec((3, 8, lt), lambda i: (0, 0, i), **x_spec_kwargs),
        ],
        out_specs=pl.BlockSpec((8, lt), lambda i: (0, i)),
        compiler_params=pltpu.CompilerParams(**cp_kwargs),
    )(w_packed, xt)

    # Output uses the same (sublane, lane) ordering as the input packing:
    # free reshape, then slice off the padded samples.
    return out.reshape(n_pad)[:n].reshape(n, 1)


@functools.partial(jax.jit, static_argnames=_STATIC_ARGS)
def ae_forward(x, w_packed, *, lane_tile=LANE_TILE_DEFAULT,
               min_steps=MIN_STEPS_DEFAULT, ship_dtype=jnp.float32,
               compute_dtype=jnp.float32, input_buffers=2):
    """Sample-major [N, 3] compatibility entry point (pays one HBM transpose)."""
    return ae_forward_planar(
        jnp.swapaxes(x, 0, 1), w_packed, lane_tile=lane_tile,
        min_steps=min_steps, ship_dtype=ship_dtype,
        compute_dtype=compute_dtype, input_buffers=input_buffers)


def _ref_forward(x, params):
    """Pure-JAX reference mirroring the PyTorch forward."""
    z = jnp.maximum(x @ params["w1"].T + params["b1"], 0.0)
    z = jnp.maximum(z @ params["w2"].T + params["b2"], 0.0)
    c = jnp.maximum(z @ params["w3"].T + params["b3"], 0.0)
    return BIAS_STRENGTH * (c - BIAS_VALUE) ** 2


def _init_params(key):
    """Deterministic init matching nn.Linear shapes (U(-1/sqrt(in), 1/sqrt(in)))."""
    ks = jax.random.split(key, 6)

    def lin(kw, kb, out_dim, in_dim):
        bound = 1.0 / jnp.sqrt(in_dim)
        w = jax.random.uniform(kw, (out_dim, in_dim), jnp.float32, -bound, bound)
        b = jax.random.uniform(kb, (out_dim,), jnp.float32, -bound, bound)
        return w, b

    w1, b1 = lin(ks[0], ks[1], 4, 3)   # enc1L
    w2, b2 = lin(ks[2], ks[3], 2, 4)   # enc2L
    w3, b3 = lin(ks[4], ks[5], 1, 2)   # enc3L
    return {"w1": w1, "b1": b1, "w2": w2, "b2": b2, "w3": w3, "b3": b3}


if __name__ == "__main__":
    key = jax.random.PRNGKey(0)
    k_x, k_p, k_x2 = jax.random.split(key, 3)

    params = _init_params(k_p)
    w_packed = pack_params(params)          # hoisted out of the per-call path

    # 1) default f32 path, sample-major compatibility API (small, unaligned N)
    n1 = 200
    x1 = jax.random.normal(k_x, (n1, 3), jnp.float32)
    ref1 = _ref_forward(x1, params)
    out1 = jax.block_until_ready(ae_forward(x1, w_packed))
    assert out1.shape == (n1, 1), out1.shape
    assert jnp.allclose(out1, ref1, atol=1e-5, rtol=1e-5)

    # 2) feature-major planar API (preferred contract, no transpose glue)
    out1p = jax.block_until_ready(ae_forward_planar(x1.T, w_packed))
    assert jnp.allclose(out1p, ref1, atol=1e-5, rtol=1e-5)

    # 3) multi-tile grid path (small forced lane tile to exercise >1 grid step)
    n2 = 2400
    x2 = jax.random.normal(k_x2, (n2, 3), jnp.float32)
    ref2 = _ref_forward(x2, params)
    out2 = jax.block_until_ready(ae_forward(x2, w_packed, lane_tile=128))
    assert out2.shape == (n2, 1), out2.shape
    assert jnp.allclose(out2, ref2, atol=1e-5, rtol=1e-5)

    # 4) opt-in low-precision paths (loose tolerance; exactness is verified by
    #    the f32 checks above). v6e/v7x lever: bf16 ship + bf16 chain math.
    out_v6 = jax.block_until_ready(ae_forward_planar(
        x1.T, w_packed, ship_dtype=jnp.bfloat16, compute_dtype=jnp.bfloat16))
    assert jnp.allclose(out_v6, ref1, atol=1e-1, rtol=1e-1)
    #    v5e lever: bf16 ship (half the HBM bytes), f32 math in-kernel.
    out_v5 = jax.block_until_ready(ae_forward_planar(
        x1.T, w_packed, ship_dtype=jnp.bfloat16, compute_dtype=jnp.float32))
    assert jnp.allclose(out_v5, ref1, atol=1e-1, rtol=1e-1)

    print("KERNEL_OK")
</pallas_src>

<mosaic_0001>
module attributes {stable_mosaic.version = 11 : i64} {
  func.func @_ae_kernel(%arg0: i32, %arg1: memref<29xf32, #tpu.memory_space<smem>>, %arg2: memref<3x8x128xf32, #tpu.memory_space<vmem>>, %arg3: memref<8x128xf32, #tpu.memory_space<vmem>>) attributes {dimension_semantics = [#tpu.dimension_semantics<parallel>], iteration_bounds = array<i64: 1>, scalar_prefetch = 0 : i64, scratch_operands = 0 : i64, tpu.core_type = #tpu.core_type<tc>, window_params = [{transform_indices = @transform_0, window_bounds = array<i64: 29>}, {transform_indices = @transform_1, window_bounds = array<i64: 3, 8, 128>}, {transform_indices = @transform_2, window_bounds = array<i64: 8, 128>}]} {
    %c0 = arith.constant 0 : index
    %c0_0 = arith.constant 0 : index
    %c0_1 = arith.constant 0 : index
    %0 = vector.load %arg2[%c0, %c0_0, %c0_1] : memref<3x8x128xf32, #tpu.memory_space<vmem>>, vector<1x8x128xf32>
    %1 = vector.shape_cast %0 : vector<1x8x128xf32> to vector<8x128xf32>
    %c1 = arith.constant 1 : index
    %c0_2 = arith.constant 0 : index
    %c0_3 = arith.constant 0 : index
    %2 = vector.load %arg2[%c1, %c0_2, %c0_3] : memref<3x8x128xf32, #tpu.memory_space<vmem>>, vector<1x8x128xf32>
    %3 = vector.shape_cast %2 : vector<1x8x128xf32> to vector<8x128xf32>
    %c2 = arith.constant 2 : index
    %c0_4 = arith.constant 0 : index
    %c0_5 = arith.constant 0 : index
    %4 = vector.load %arg2[%c2, %c0_4, %c0_5] : memref<3x8x128xf32, #tpu.memory_space<vmem>>, vector<1x8x128xf32>
    %5 = vector.shape_cast %4 : vector<1x8x128xf32> to vector<8x128xf32>
    %c0_6 = arith.constant 0 : index
    %6 = memref.load %arg1[%c0_6] : memref<29xf32, #tpu.memory_space<smem>>
    %7 = vector.broadcast %6 : f32 to vector<8x128xf32>
    %8 = arith.mulf %7, %1 : vector<8x128xf32>
    %c1_7 = arith.constant 1 : index
    %9 = memref.load %arg1[%c1_7] : memref<29xf32, #tpu.memory_space<smem>>
    %10 = vector.broadcast %9 : f32 to vector<8x128xf32>
    %11 = arith.mulf %10, %3 : vector<8x128xf32>
    %12 = arith.addf %8, %11 : vector<8x128xf32>
    %c2_8 = arith.constant 2 : index
    %13 = memref.load %arg1[%c2_8] : memref<29xf32, #tpu.memory_space<smem>>
    %14 = vector.broadcast %13 : f32 to vector<8x128xf32>
    %15 = arith.mulf %14, %5 : vector<8x128xf32>
    %16 = arith.addf %12, %15 : vector<8x128xf32>
    %c12 = arith.constant 12 : index
    %17 = memref.load %arg1[%c12] : memref<29xf32, #tpu.memory_space<smem>>
    %18 = vector.broadcast %17 : f32 to vector<8x128xf32>
    %19 = arith.addf %16, %18 : vector<8x128xf32>
    %cst = arith.constant 0.000000e+00 : f32
    %20 = vector.broadcast %cst : f32 to vector<8x128xf32>
    %21 = arith.maximumf %19, %20 : vector<8x128xf32>
    %c3 = arith.constant 3 : index
    %22 = memref.load %arg1[%c3] : memref<29xf32, #tpu.memory_space<smem>>
    %23 = vector.broadcast %22 : f32 to vector<8x128xf32>
    %24 = arith.mulf %23, %1 : vector<8x128xf32>
    %c4 = arith.constant 4 : index
    %25 = memref.load %arg1[%c4] : memref<29xf32, #tpu.memory_space<smem>>
    %26 = vector.broadcast %25 : f32 to vector<8x128xf32>
    %27 = arith.mulf %26, %3 : vector<8x128xf32>
    %28 = arith.addf %24, %27 : vector<8x128xf32>
    %c5 = arith.constant 5 : index
    %29 = memref.load %arg1[%c5] : memref<29xf32, #tpu.memory_space<smem>>
    %30 = vector.broadcast %29 : f32 to vector<8x128xf32>
    %31 = arith.mulf %30, %5 : vector<8x128xf32>
    %32 = arith.addf %28, %31 : vector<8x128xf32>
    %c13 = arith.constant 13 : index
    %33 = memref.load %arg1[%c13] : memref<29xf32, #tpu.memory_space<smem>>
    %34 = vector.broadcast %33 : f32 to vector<8x128xf32>
    %35 = arith.addf %32, %34 : vector<8x128xf32>
    %cst_9 = arith.constant 0.000000e+00 : f32
    %36 = vector.broadcast %cst_9 : f32 to vector<8x128xf32>
    %37 = arith.maximumf %35, %36 : vector<8x128xf32>
    %c6 = arith.constant 6 : index
    %38 = memref.load %arg1[%c6] : memref<29xf32, #tpu.memory_space<smem>>
    %39 = vector.broadcast %38 : f32 to vector<8x128xf32>
    %40 = arith.mulf %39, %1 : vector<8x128xf32>
    %c7 = arith.constant 7 : index
    %41 = memref.load %arg1[%c7] : memref<29xf32, #tpu.memory_space<smem>>
    %42 = vector.broadcast %41 : f32 to vector<8x128xf32>
    %43 = arith.mulf %42, %3 : vector<8x128xf32>
    %44 = arith.addf %40, %43 : vector<8x128xf32>
    %c8 = arith.constant 8 : index
    %45 = memref.load %arg1[%c8] : memref<29xf32, #tpu.memory_space<smem>>
    %46 = vector.broadcast %45 : f32 to vector<8x128xf32>
    %47 = arith.mulf %46, %5 : vector<8x128xf32>
    %48 = arith.addf %44, %47 : vector<8x128xf32>
    %c14 = arith.constant 14 : index
    %49 = memref.load %arg1[%c14] : memref<29xf32, #tpu.memory_space<smem>>
    %50 = vector.broadcast %49 : f32 to vector<8x128xf32>
    %51 = arith.addf %48, %50 : vector<8x128xf32>
    %cst_10 = arith.constant 0.000000e+00 : f32
    %52 = vector.broadcast %cst_10 : f32 to vector<8x128xf32>
    %53 = arith.maximumf %51, %52 : vector<8x128xf32>
    %c9 = arith.constant 9 : index
    %54 = memref.load %arg1[%c9] : memref<29xf32, #tpu.memory_space<smem>>
    %55 = vector.broadcast %54 : f32 to vector<8x128xf32>
    %56 = arith.mulf %55, %1 : vector<8x128xf32>
    %c10 = arith.constant 10 : index
    %57 = memref.load %arg1[%c10] : memref<29xf32, #tpu.memory_space<smem>>
    %58 = vector.broadcast %57 : f32 to vector<8x128xf32>
    %59 = arith.mulf %58, %3 : vector<8x128xf32>
    %60 = arith.addf %56, %59 : vector<8x128xf32>
    %c11 = arith.constant 11 : index
    %61 = memref.load %arg1[%c11] : memref<29xf32, #tpu.memory_space<smem>>
    %62 = vector.broadcast %61 : f32 to vector<8x128xf32>
    %63 = arith.mulf %62, %5 : vector<8x128xf32>
    %64 = arith.addf %60, %63 : vector<8x128xf32>
    %c15 = arith.constant 15 : index
    %65 = memref.load %arg1[%c15] : memref<29xf32, #tpu.memory_space<smem>>
    %66 = vector.broadcast %65 : f32 to vector<8x128xf32>
    %67 = arith.addf %64, %66 : vector<8x128xf32>
    %cst_11 = arith.constant 0.000000e+00 : f32
    %68 = vector.broadcast %cst_11 : f32 to vector<8x128xf32>
    %69 = arith.maximumf %67, %68 : vector<8x128xf32>
    %c16 = arith.constant 16 : index
    %70 = memref.load %arg1[%c16] : memref<29xf32, #tpu.memory_space<smem>>
    %71 = vector.broadcast %70 : f32 to vector<8x128xf32>
    %72 = arith.mulf %71, %21 : vector<8x128xf32>
    %c17 = arith.constant 17 : index
    %73 = memref.load %arg1[%c17] : memref<29xf32, #tpu.memory_space<smem>>
    %74 = vector.broadcast %73 : f32 to vector<8x128xf32>
    %75 = arith.mulf %74, %37 : vector<8x128xf32>
    %76 = arith.addf %72, %75 : vector<8x128xf32>
    %c18 = arith.constant 18 : index
    %77 = memref.load %arg1[%c18] : memref<29xf32, #tpu.memory_space<smem>>
    %78 = vector.broadcast %77 : f32 to vector<8x128xf32>
    %79 = arith.mulf %78, %53 : vector<8x128xf32>
    %80 = arith.addf %76, %79 : vector<8x128xf32>
    %c19 = arith.constant 19 : index
    %81 = memref.load %arg1[%c19] : memref<29xf32, #tpu.memory_space<smem>>
    %82 = vector.broadcast %81 : f32 to vector<8x128xf32>
    %83 = arith.mulf %82, %69 : vector<8x128xf32>
    %84 = arith.addf %80, %83 : vector<8x128xf32>
    %c24 = arith.constant 24 : index
    %85 = memref.load %arg1[%c24] : memref<29xf32, #tpu.memory_space<smem>>
    %86 = vector.broadcast %85 : f32 to vector<8x128xf32>
    %87 = arith.addf %84, %86 : vector<8x128xf32>
    %cst_12 = arith.constant 0.000000e+00 : f32
    %88 = vector.broadcast %cst_12 : f32 to vector<8x128xf32>
    %89 = arith.maximumf %87, %88 : vector<8x128xf32>
    %c20 = arith.constant 20 : index
    %90 = memref.load %arg1[%c20] : memref<29xf32, #tpu.memory_space<smem>>
    %91 = vector.broadcast %90 : f32 to vector<8x128xf32>
    %92 = arith.mulf %91, %21 : vector<8x128xf32>
    %c21 = arith.constant 21 : index
    %93 = memref.load %arg1[%c21] : memref<29xf32, #tpu.memory_space<smem>>
    %94 = vector.broadcast %93 : f32 to vector<8x128xf32>
    %95 = arith.mulf %94, %37 : vector<8x128xf32>
    %96 = arith.addf %92, %95 : vector<8x128xf32>
    %c22 = arith.constant 22 : index
    %97 = memref.load %arg1[%c22] : memref<29xf32, #tpu.memory_space<smem>>
    %98 = vector.broadcast %97 : f32 to vector<8x128xf32>
    %99 = arith.mulf %98, %53 : vector<8x128xf32>
    %100 = arith.addf %96, %99 : vector<8x128xf32>
    %c23 = arith.constant 23 : index
    %101 = memref.load %arg1[%c23] : memref<29xf32, #tpu.memory_space<smem>>
    %102 = vector.broadcast %101 : f32 to vector<8x128xf32>
    %103 = arith.mulf %102, %69 : vector<8x128xf32>
    %104 = arith.addf %100, %103 : vector<8x128xf32>
    %c25 = arith.constant 25 : index
    %105 = memref.load %arg1[%c25] : memref<29xf32, #tpu.memory_space<smem>>
    %106 = vector.broadcast %105 : f32 to vector<8x128xf32>
    %107 = arith.addf %104, %106 : vector<8x128xf32>
    %cst_13 = arith.constant 0.000000e+00 : f32
    %108 = vector.broadcast %cst_13 : f32 to vector<8x128xf32>
    %109 = arith.maximumf %107, %108 : vector<8x128xf32>
    %c26 = arith.constant 26 : index
    %110 = memref.load %arg1[%c26] : memref<29xf32, #tpu.memory_space<smem>>
    %111 = vector.broadcast %110 : f32 to vector<8x128xf32>
    %112 = arith.mulf %111, %89 : vector<8x128xf32>
    %c27 = arith.constant 27 : index
    %113 = memref.load %arg1[%c27] : memref<29xf32, #tpu.memory_space<smem>>
    %114 = vector.broadcast %113 : f32 to vector<8x128xf32>
    %115 = arith.mulf %114, %109 : vector<8x128xf32>
    %116 = arith.addf %112, %115 : vector<8x128xf32>
    %c28 = arith.constant 28 : index
    %117 = memref.load %arg1[%c28] : memref<29xf32, #tpu.memory_space<smem>>
    %118 = vector.broadcast %117 : f32 to vector<8x128xf32>
    %119 = arith.addf %116, %118 : vector<8x128xf32>
    %cst_14 = arith.constant 0.000000e+00 : f32
    %120 = vector.broadcast %cst_14 : f32 to vector<8x128xf32>
    %121 = arith.maximumf %119, %120 : vector<8x128xf32>
    %122 = arith.mulf %121, %121 : vector<8x128xf32>
    %c0_15 = arith.constant 0 : index
    %c0_16 = arith.constant 0 : index
    %123 = vector.load %arg3[%c0_15, %c0_16] : memref<8x128xf32, #tpu.memory_space<vmem>>, vector<8x128xf32>
    tpu.vector_store %arg3[%c0_15, %c0_16], %122 {strides = array<i32>} : memref<8x128xf32, #tpu.memory_space<vmem>>, vector<8x128xf32>,
    return
  }
  func.func @transform_0(%arg0: i32) -> i32 {
    %c0_i32 = arith.constant 0 : i32
    %c0_i32_0 = arith.constant 0 : i32
    return %c0_i32 : i32
  }
  func.func @transform_1(%arg0: i32) -> (i32, i32, i32) {
    %c0_i32 = arith.constant 0 : i32
    %c0_i32_0 = arith.constant 0 : i32
    %c0_i32_1 = arith.constant 0 : i32
    return %c0_i32, %c0_i32_0, %arg0 : i32, i32, i32
  }
  func.func @transform_2(%arg0: i32) -> (i32, i32) {
    %c0_i32 = arith.constant 0 : i32
    %c0_i32_0 = arith.constant 0 : i32
    return %c0_i32, %arg0 : i32, i32
  }
}

</mosaic_0001>

<bundles_post_ra>
// kernel: ae_forward_planar.1
= control target key start
LH: loop header
LB: loop body
LE: loop exit
PB: predicated region body
PF: predicated region fallthrough
CT: control target
= control target key end

     0   :  { %7 = vsyncpa [#allocation3], 0  ;;  %s275_s0 = inlined_call_operand.vmem [shape: f32[29], index: 0, kind: input, shape index: {}]   ;;  %s276_s1 = inlined_call_operand.vmem [shape: f32[3,8,128], index: 1, kind: input, shape index: {}]   ;;  %s277_s2 = inlined_call_operand.vmem [shape: f32[8,128], index: 2, kind: output, shape index: {}]  }
   0x1   :  { %s14_s11 = sshll.u32 %s275_s0, 4  ;;  %s15_s11 = int_to_ptr.vmem [resolvable:$true] %s14_s11 }
   0x2   :  { %s176_s12 = scalar_lea.vmem %s15_s11, 16  ;;  %p181_p1 = scmp.lt.s32.totalorder %s15_s11, %s15_s11 }
   0x3   :  { %p177_p0 = scmp.ne.s32.totalorder %s15_s11, %s176_s12  ;;  %p182_p2 = scmp.lt.s32.totalorder %s176_s12, %s176_s12 }
   0x5   :  { %p183_p3 = por %p182_p2, %p181_p1 }
   0x7   :  { %p184_p4 = pnand %p183_p3, %p177_p0 }
   0x9   :  { %187 = shalt.err (!%p184_p4)
}
   0xa   :  { %s190_s13 = smov [#allocation2]  }
   0xb   :  { %17 = dma.vmem_to_smem %s15_s11, 16, %s190_s13, [#allocation3]  }
   0xc   :  { %188 = dma.done.wait [#allocation3], 16  }
   0xd   :  { %189 = vsyncadd [#allocation3], 4294967280 }
   0xe   :  { %23 = sfence }
   0xf   :  { %s29_s14 = sld [smem:[#allocation2]]  ;;  %s147_s15 = sld [smem:[#allocation2 + $0x1]]  ;;  %v24_v0 = vld [vmem:[%s276_s1] sm:$0xff]  ;;  %v145_v1 = vld [vmem:[%s276_s1 + $0x8] sm:$0xff]  ;;  %v146_v2 = vld [vmem:[%s276_s1 + $0x10] sm:$0xff] }
  0x10   :  { %s148_s16 = sld [smem:[#allocation2 + $0x2]]  ;;  %s209_s17 = sld [smem:[#allocation2 + $0xc]] }
  0x11   :  { %s150_s18 = sld [smem:[#allocation2 + $0x3]]  ;;  %s151_s0 = sld [smem:[#allocation2 + $0x4]] }
  0x12   :  { %s152_s19 = sld [smem:[#allocation2 + $0x5]]  ;;  %s216_s23 = sld [smem:[#allocation2 + $0x6]] }
  0x13   :  { %s214_s22 = sld [smem:[#allocation2 + $0xd]]  ;;  %s224_s28 = sld [smem:[#allocation2 + $0x7]] }
  0x14   :  { %s226_s29 = sld [smem:[#allocation2 + $0x8]]  ;;  %s228_s30 = sld [smem:[#allocation2 + $0xe]] }
  0x15   :  { %v30_v3 = vstv %s29_s14  ;;  %s230_s3 = sld [smem:[#allocation2 + $0x9]]  ;;  %v33_v5 = vstv %s147_s15  ;;  %s232_s4 = sld [smem:[#allocation2 + $0xa]] }
  0x16   :  { %v31_v4 = vmul.f32 %v30_v3, %v24_v0  ;;  %v37_v6 = vstv %s148_s16  ;;  %s234_s5 = sld [smem:[#allocation2 + $0xb]]  ;;  %v34_v7 = vmul.f32 %v145_v1, %v33_v5  ;;  %s236_s1 = sld [smem:[#allocation2 + $0x10]]  ;;  %v41_v16 = vstv %s209_s17 }
  0x17   :  { %v38_v8 = vmul.f32 %v146_v2, %v37_v6  ;;  %v45_v9 = vstv %s150_s18  ;;  %v48_v11 = vstv %s151_s0  ;;  %s238_s6 = sld [smem:[#allocation2 + $0xf]]  ;;  %s240_s7 = sld [smem:[#allocation2 + $0x11]] }
  0x18   :  { %v46_v10 = vmul.f32 %v45_v9, %v24_v0  ;;  %v52_v12 = vstv %s152_s19  ;;  %v35_v13 = vadd.f32 %v34_v7, %v31_v4  ;;  %v49_v14 = vmul.f32 %v145_v1, %v48_v11  ;;  %s242_s8 = sld [smem:[#allocation2 + $0x12]]  ;;  %s248_s9 = sld [smem:[#allocation2 + $0x14]] }
  0x19   :  { %v53_v15 = vmul.f32 %v146_v2, %v52_v12  ;;  %v60_v17 = vstv %s216_s23  ;;  %v63_v18 = vstv %s224_s28  ;;  %s250_s10 = sld [smem:[#allocation2 + $0x15]]  ;;  %s252_s11 = sld [smem:[#allocation2 + $0x16]]  ;;  %v56_v24 = vstv %s214_s22 }
  0x1a   :  { %v67_v19 = vstv %s226_s29  ;;  %v39_v20 = vadd.f32 %v38_v8, %v35_v13  ;;  %v50_v21 = vadd.f32 %v49_v14, %v46_v10  ;;  %v61_v22 = vmul.f32 %v60_v17, %v24_v0  ;;  %s257_s12 = sld [smem:[#allocation2 + $0x13]]  ;;  %s259_s13 = sld [smem:[#allocation2 + $0x17]] }
  0x1b   :  { %v64_v23 = vmul.f32 %v145_v1, %v63_v18  ;;  %v68_v25 = vmul.f32 %v146_v2, %v67_v19  ;;  %v75_v26 = vstv %s230_s3  ;;  %v78_v27 = vstv %s232_s4  ;;  %s166_s14 = sld [smem:[#allocation2 + $0x18]]  ;;  %s171_s15 = sld [smem:[#allocation2 + $0x19]] }
  0x1c   :  { %v42_v28 = vadd.f32 %v41_v16, %v39_v20  ;;  %v54_v29 = vadd.f32 %v53_v15, %v50_v21  ;;  %v76_v31 = vmul.f32 %v75_v26, %v24_v0  ;;  %v71_v32 = vstv %s228_s30  ;;  %s172_s16 = sld [smem:[#allocation2 + $0x1a]]  ;;  %s173_s17 = sld [smem:[#allocation2 + $0x1b]] }
  0x1d   :  { %v65_v30 = vadd.f32 %v64_v23, %v61_v22  ;;  %v79_v33 = vmul.f32 %v145_v1, %v78_v27  ;;  %v82_v34 = vstv %s234_s5  ;;  %v90_v35 = vstv %s236_s1  ;;  %s174_s18 = sld [smem:[#allocation2 + $0x1c]] }
  0x1e   :  { %v43_v36 = vmax.f32 %v42_v28, 0.0  ;;  %v57_v37 = vadd.f32 %v56_v24, %v54_v29  ;;  %v83_v39 = vmul.f32 %v146_v2, %v82_v34  ;;  %v86_v41 = vstv %s238_s6 }
  0x1f   :  { %v69_v38 = vadd.f32 %v68_v25, %v65_v30  ;;  %v80_v40 = vadd.f32 %v79_v33, %v76_v31  ;;  %v93_v42 = vstv %s240_s7  ;;  %v97_v46 = vstv %s242_s8 }
  0x20   :  { %v58_v43 = vmax.f32 %v57_v37, 0.0  ;;  %v91_v45 = vmul.f32 %v90_v35, %v43_v36  ;;  %v109_v48 = vstv %s248_s9  ;;  %v112_v49 = vstv %s250_s10 }
  0x21   :  { %v72_v44 = vadd.f32 %v71_v32, %v69_v38  ;;  %v84_v47 = vadd.f32 %v83_v39, %v80_v40  ;;  %v116_v50 = vstv %s252_s11  ;;  %v110_v53 = vmul.f32 %v109_v48, %v43_v36 }
  0x22   :  { %v94_v52 = vmul.f32 %v93_v42, %v58_v43  ;;  %v113_v54 = vmul.f32 %v112_v49, %v58_v43  ;;  %v101_v56 = vstv %s257_s12  ;;  %v120_v57 = vstv %s259_s13 }
  0x23   :  { %v73_v51 = vmax.f32 %v72_v44, 0.0  ;;  %v87_v55 = vadd.f32 %v86_v41, %v84_v47  ;;  %v105_v3 = vstv %s166_s14  ;;  %v124_v4 = vstv %s171_s15 }
  0x24   :  { %v95_v58 = vadd.f32 %v94_v52, %v91_v45  ;;  %v114_v60 = vadd.f32 %v113_v54, %v110_v53  ;;  %v128_v9 = vstv %s172_s16  ;;  %v131_v10 = vstv %s173_s17 }
  0x25   :  { %v98_v59 = vmul.f32 %v97_v46, %v73_v51  ;;  %v117_v61 = vmul.f32 %v116_v50, %v73_v51  ;;  %v88_v62 = vmax.f32 %v87_v55, 0.0  ;;  %v135_v15 = vstv %s174_s18 }
  0x27   :  { %v99_v63 = vadd.f32 %v98_v59, %v95_v58  ;;  %v118_v0 = vadd.f32 %v117_v61, %v114_v60  ;;  %v102_v1 = vmul.f32 %v101_v56, %v88_v62  ;;  %v121_v2 = vmul.f32 %v120_v57, %v88_v62 }
  0x29   :  { %v103_v5 = vadd.f32 %v102_v1, %v99_v63  ;;  %v122_v6 = vadd.f32 %v121_v2, %v118_v0 }
  0x2b   :  { %v106_v7 = vadd.f32 %v105_v3, %v103_v5  ;;  %v125_v8 = vadd.f32 %v124_v4, %v122_v6 }
  0x2d   :  { %v107_v11 = vmax.f32 %v106_v7, 0.0  ;;  %v126_v12 = vmax.f32 %v125_v8, 0.0 }
  0x2f   :  { %v129_v13 = vmul.f32 %v128_v9, %v107_v11  ;;  %v132_v14 = vmul.f32 %v131_v10, %v126_v12 }
  0x31   :  { %v133_v16 = vadd.f32 %v132_v14, %v129_v13 }
  0x33   :  { %v136_v17 = vadd.f32 %v135_v15, %v133_v16 }
  0x35   :  { %v137_v18 = vmax.f32 %v136_v17, 0.0 }
  0x37   :  { %v138_v19 = vmul.f32 %v137_v18, %v137_v18 }
  0x39   :  { %139 = vst [vmem:[%s277_s2] sm:$0xff] %v138_v19 }
  0x3a   :  { %144 = vsyncpa [#allocation3], 1 }

</bundles_post_ra>
